<compile_context>
chip_gen: v7x
topology: tpu7x:2x2x1
jax: 0.10.0
libtpu: 0.0.40
codegen_flags: <defaults>
</compile_context>

<pallas_src>
import jax
import jax.numpy as jnp
from jax import lax
from jax.experimental import pallas as pl
from jax.experimental.pallas import tpu as pltpu


def _round_up(x, m):
    return (x + m - 1) // m * m


def _make_convkb_kernel(num_filters, chunk, compute_dtype):
    """Builds the per-tile kernel (static filter count / chunk size / dtype)."""
    is_f32 = jnp.dtype(compute_dtype) == jnp.dtype(jnp.float32)
    unrolled = num_filters <= 16

    if is_f32:
        def wcast(x):
            # Raw SMEM scalar: Mosaic splats it at the vector use site.
            return x
    else:
        def wcast(x):
            # Splat to a (1,1) f32 vector first, then vector-convert to bf16;
            # avoids relying on scalar-unit f32->bf16 conversion.
            return jnp.full((1, 1), x, dtype=jnp.float32).astype(compute_dtype)

    def kernel(h_ref, r_ref, t_ref, dpw_ref, sel_ref, cw_ref, cb_ref, out_ref):
        """Per-batch-tile ConvKB score (lane-packed layout).

        h_ref, r_ref, t_ref : (R, L)  VMEM  packed head / relation / tail,
                                            L = E * P, each 128-lane row holds
                                            P consecutive batch rows of width E.
        dpw_ref             : (F, L)  VMEM  dot-product weight tiled P times.
        sel_ref             : (L, P)  VMEM  0/1 segment-selection matrix
                                            (sel[l, p] = 1 iff l // E == p).
        cw_ref              : (F, 3)  SMEM  conv weights (w_head, w_rel, w_tail).
        cb_ref              : (F,)    SMEM  conv bias.
        out_ref             : (R, P)  VMEM  scores; batch index = row * P + p.
        """
        n_rows = h_ref.shape[0]
        n_chunks = n_rows // chunk

        # Hoist the F dpw rows out of the row-chunk loop (F vregs, F <= 16).
        dpw_rows = ([dpw_ref[pl.ds(f, 1), :] for f in range(num_filters)]
                    if unrolled else None)

        def chunk_body(c):
            row0 = c * chunk
            if not isinstance(row0, int):
                row0 = pl.multiple_of(row0, chunk)
            # Chunk operands live in vregs for the whole filter loop.
            h = h_ref[pl.ds(row0, chunk), :]
            r = r_ref[pl.ds(row0, chunk), :]
            t = t_ref[pl.ds(row0, chunk), :]

            def contrib(f, dpw_row):
                w_h = wcast(cw_ref[f, 0])
                w_r = wcast(cw_ref[f, 1])
                w_t = wcast(cw_ref[f, 2])
                b = wcast(cb_ref[f])
                # Conv2d(1, F, (1,3)) at every embedding position (VPU only):
                pre = h * w_h + r * w_r + t * w_t + b
                act = jnp.maximum(pre, 0.0)                    # ReLU
                return (act * dpw_row).astype(jnp.float32)     # f32 accumulate

            if unrolled:
                # Accumulator initialized with the f=0 term (no zero-init pass).
                acc = contrib(0, dpw_rows[0])
                for f in range(1, num_filters):
                    acc = acc + contrib(f, dpw_rows[f])
            else:
                acc = contrib(0, dpw_ref[pl.ds(0, 1), :])

                def filt_step(f, a):
                    return a + contrib(f, dpw_ref[pl.ds(f, 1), :])

                acc = lax.fori_loop(1, num_filters, filt_step, acc, unroll=8)

            # Segmented lane reduction for this chunk: (chunk, L) @ (L, P).
            out_ref[pl.ds(row0, chunk), :] = jnp.dot(
                acc, sel_ref[...], preferred_element_type=jnp.float32)

        if n_chunks == 1:
            chunk_body(0)
        else:
            pl.loop(0, n_chunks)(chunk_body)

    return kernel


def convkb_forward(triples, entity_embeddings, relation_embeddings,
                   conv_weight, conv_bias, dot_product_weight,
                   *, max_batch_rows_per_tile=8192,
                   compute_dtype=jnp.float32):
    """Pure-JAX glue (embedding gathers, packing, padding) + Pallas hot path.

    compute_dtype=jnp.bfloat16 enables the bf16 pre-activation path
    (recommended on v6e/v7x); accumulation and the final selection matmul
    always stay in f32.
    """
    batch_shape = triples.shape[:-1]
    flat = triples.reshape(-1, 3)
    # Column convention follows the PyTorch module exactly:
    #   triples[:, 0]=head, triples[:, 1]=tail, triples[:, 2]=relation.
    head = entity_embeddings[flat[:, 0]].astype(compute_dtype)   # (B, E)
    tail = entity_embeddings[flat[:, 1]].astype(compute_dtype)   # (B, E)
    rel = relation_embeddings[flat[:, 2]].astype(compute_dtype)  # (B, E)

    B, E = head.shape
    F_ = conv_weight.shape[0]
    itemsize = jnp.dtype(compute_dtype).itemsize

    # Lane packing factor: pack P batch rows per 128-lane row when E < 128.
    P = 128 // E if (E < 128 and 128 % E == 0) else 1
    L = E * P

    # Sublane quantum after packing (16 rows per vreg for 16-bit dtypes).
    sub_q = max(8, 32 // itemsize)
    row_quantum = sub_q * P

    # Batch tile size (batch rows): large (default 8192) to amortize the
    # ~0.35 us per-grid-step cost, clamped to ceil(B/2) so the grid keeps
    # >= 2 steps whenever the batch allows it (v7x has 2 TensorCores and the
    # grid axis is "parallel").  At the default tile the double-buffered
    # inputs are ~6.3 MiB, under every generation's default scoped-VMEM limit.
    tb_cap = _round_up(max(max_batch_rows_per_tile, row_quantum), row_quantum)
    tb_half = _round_up(max((B + 1) // 2, 1), row_quantum)
    TB = min(tb_cap, tb_half)

    B_pad = _round_up(B, TB)
    if B_pad != B:
        pad = B_pad - B
        head = jnp.pad(head, ((0, pad), (0, 0)))
        rel = jnp.pad(rel, ((0, pad), (0, 0)))
        tail = jnp.pad(tail, ((0, pad), (0, 0)))

    R = TB // P                                   # packed rows per tile
    head_p = head.reshape(B_pad // P, L)          # free row-major reshape
    rel_p = rel.reshape(B_pad // P, L)
    tail_p = tail.reshape(B_pad // P, L)

    # In-kernel row-chunk size: largest of (32, 16, 8) that respects the
    # sublane quantum and divides the tile (keeps operands vreg-resident
    # without spilling).
    chunk = sub_q
    for cand in (32, 16, 8):
        if cand >= sub_q and R % cand == 0:
            chunk = cand
            break

    cw = conv_weight.reshape(F_, 3).astype(jnp.float32)            # (F, 3)
    cb = conv_bias.reshape(F_).astype(jnp.float32)                 # (F,)
    dpw = dot_product_weight.reshape(F_, E).astype(compute_dtype)  # (F, E)
    dpw_tiled = jnp.tile(dpw, (1, P))                              # (F, L)

    # Segment-selection matrix for the per-chunk lane reduction (f32 MXU).
    lane = jnp.arange(L, dtype=jnp.int32) // E
    sel = (lane[:, None] == jnp.arange(P, dtype=jnp.int32)[None, :]
           ).astype(jnp.float32)                                   # (L, P)

    # Only set an explicit scoped-VMEM limit when a large user-requested tile
    # would exceed v5e's 16 MiB default (default TB=8192 stays well under it).
    est_vmem = (3 * 2 * R * L * itemsize          # h/r/t, double buffered
                + 2 * R * P * 4                   # out, double buffered
                + 2 * F_ * L * itemsize           # dpw (resident)
                + 2 * L * P * 4                   # sel (resident)
                + (1 << 20))                      # slack
    cp_kwargs = {"dimension_semantics": ("parallel",)}
    if est_vmem > (12 << 20):
        cp_kwargs["vmem_limit_bytes"] = int(
            min(max(est_vmem * 5 // 4, 16 << 20), 60 << 20))

    grid = (B_pad // TB,)
    kernel = _make_convkb_kernel(F_, chunk, compute_dtype)

    out = pl.pallas_call(
        kernel,
        out_shape=jax.ShapeDtypeStruct((B_pad // P, P), jnp.float32),
        grid=grid,
        in_specs=[
            pl.BlockSpec((R, L), lambda i: (i, 0)),    # head  (packed)
            pl.BlockSpec((R, L), lambda i: (i, 0)),    # rel   (packed)
            pl.BlockSpec((R, L), lambda i: (i, 0)),    # tail  (packed)
            pl.BlockSpec((F_, L), lambda i: (0, 0)),   # dpw tiled (resident)
            pl.BlockSpec((L, P), lambda i: (0, 0)),    # selection (resident)
            pl.BlockSpec(memory_space=pltpu.MemorySpace.SMEM),  # conv weights
            pl.BlockSpec(memory_space=pltpu.MemorySpace.SMEM),  # conv bias
        ],
        out_specs=pl.BlockSpec((R, P), lambda i: (i, 0)),
        compiler_params=pltpu.CompilerParams(**cp_kwargs),
    )(head_p, rel_p, tail_p, dpw_tiled, sel, cw, cb)

    # Padded rows produce relu(bias)-driven garbage; slice them off here.
    score = out.reshape(B_pad)[:B]
    return score.reshape(batch_shape)


def convkb_reference(triples, entity_embeddings, relation_embeddings,
                     conv_weight, conv_bias, dot_product_weight):
    """Plain-JAX reference matching the PyTorch forward (eval mode)."""
    batch_shape = triples.shape[:-1]
    flat = triples.reshape(-1, 3)
    h = entity_embeddings[flat[:, 0]]
    t = entity_embeddings[flat[:, 1]]
    r = relation_embeddings[flat[:, 2]]
    x = jnp.stack((h, r, t), axis=-1)                     # (B, E, 3)
    cw = conv_weight.reshape(-1, 3)                       # (F, 3)
    conv_out = jnp.einsum('bew,fw->bfe', x, cw) + conv_bias[None, :, None]
    act = jnp.maximum(conv_out, 0.0)                      # (B, F, E)
    feat = act.reshape(act.shape[0], -1)                  # (B, F*E), index f*E+e
    score = feat @ dot_product_weight                     # (B, 1)
    return score.reshape(batch_shape)


if __name__ == "__main__":
    embedding_size = 32
    num_filters = 8
    num_entities = 16
    num_relations = 4
    batch_shape = (2, 4)

    key = jax.random.PRNGKey(0)
    k_ent, k_rel, k_cw, k_cb, k_dpw, k_h, k_t, k_r = jax.random.split(key, 8)

    entity_embeddings = jax.random.normal(
        k_ent, (num_entities, embedding_size), dtype=jnp.float32)
    relation_embeddings = jax.random.normal(
        k_rel, (num_relations, embedding_size), dtype=jnp.float32)

    # Deterministic synthetic parameter init (shapes match nn.Conv2d(1,F,(1,3))
    # and the (E*F, 1) xavier-initialized dot_product_weight).
    conv_weight = 0.1 * jax.random.normal(
        k_cw, (num_filters, 1, 1, 3), dtype=jnp.float32)
    conv_bias = 0.1 * jax.random.normal(k_cb, (num_filters,), dtype=jnp.float32)
    limit = (6.0 / (embedding_size * num_filters + 1)) ** 0.5
    dot_product_weight = jax.random.uniform(
        k_dpw, (embedding_size * num_filters, 1),
        minval=-limit, maxval=limit, dtype=jnp.float32)

    heads = jax.random.randint(k_h, batch_shape, 0, num_entities)
    tails = jax.random.randint(k_t, batch_shape, 0, num_entities)
    rels = jax.random.randint(k_r, batch_shape, 0, num_relations)
    triples = jnp.stack((heads, tails, rels), axis=-1)    # (..., 3)

    expected = convkb_reference(triples, entity_embeddings, relation_embeddings,
                                conv_weight, conv_bias, dot_product_weight)

    # f32 path (default): strict tolerance vs the f32 reference.
    score = convkb_forward(triples, entity_embeddings, relation_embeddings,
                           conv_weight, conv_bias, dot_product_weight)
    score = jax.block_until_ready(score)
    assert score.shape == batch_shape
    assert jnp.allclose(score, expected, atol=1e-4, rtol=1e-4), (
        f"f32 mismatch: {score} vs {expected}")

    # bf16 pre-activation path (v6e/v7x VALU lever); loosened tolerance since
    # the conv/ReLU/dpw multiply run in bf16 (accumulation stays f32).
    score_bf16 = convkb_forward(triples, entity_embeddings, relation_embeddings,
                                conv_weight, conv_bias, dot_product_weight,
                                compute_dtype=jnp.bfloat16)
    score_bf16 = jax.block_until_ready(score_bf16)
    assert score_bf16.shape == batch_shape
    assert jnp.allclose(score_bf16, expected, atol=5e-2, rtol=5e-2), (
        f"bf16 mismatch: {score_bf16} vs {expected}")

    print("KERNEL_OK")
</pallas_src>

<mosaic_0001>
module attributes {stable_mosaic.version = 11 : i64} {
  func.func @kernel(%arg0: i32, %arg1: memref<8x128xf32, #tpu.memory_space<vmem>>, %arg2: memref<8x128xf32, #tpu.memory_space<vmem>>, %arg3: memref<8x128xf32, #tpu.memory_space<vmem>>, %arg4: memref<8x128xf32, #tpu.memory_space<vmem>>, %arg5: memref<128x4xf32, #tpu.memory_space<vmem>>, %arg6: memref<8x3xf32, #tpu.memory_space<smem>>, %arg7: memref<8xf32, #tpu.memory_space<smem>>, %arg8: memref<8x4xf32, #tpu.memory_space<vmem>>) attributes {dimension_semantics = [#tpu.dimension_semantics<parallel>], iteration_bounds = array<i64: 1>, scalar_prefetch = 0 : i64, scratch_operands = 0 : i64, tpu.core_type = #tpu.core_type<tc>, window_params = [{transform_indices = @transform_0, window_bounds = array<i64: 8, 128>}, {transform_indices = @transform_1, window_bounds = array<i64: 8, 128>}, {transform_indices = @transform_2, window_bounds = array<i64: 8, 128>}, {pipeline_mode = #tpu.pipeline_mode<synchronous>, transform_indices = @transform_3, window_bounds = array<i64: 8, 128>}, {pipeline_mode = #tpu.pipeline_mode<synchronous>, transform_indices = @transform_4, window_bounds = array<i64: 128, 4>}, {transform_indices = @transform_5, window_bounds = array<i64: 8, 3>}, {transform_indices = @transform_6, window_bounds = array<i64: 8>}, {transform_indices = @transform_7, window_bounds = array<i64: 8, 4>}]} {
    %c0 = arith.constant 0 : index
    %c0_0 = arith.constant 0 : index
    %0 = vector.load %arg4[%c0, %c0_0] : memref<8x128xf32, #tpu.memory_space<vmem>>, vector<1x128xf32>
    %c1 = arith.constant 1 : index
    %c0_1 = arith.constant 0 : index
    %1 = vector.load %arg4[%c1, %c0_1] : memref<8x128xf32, #tpu.memory_space<vmem>>, vector<1x128xf32>
    %c2 = arith.constant 2 : index
    %c0_2 = arith.constant 0 : index
    %2 = vector.load %arg4[%c2, %c0_2] : memref<8x128xf32, #tpu.memory_space<vmem>>, vector<1x128xf32>
    %c3 = arith.constant 3 : index
    %c0_3 = arith.constant 0 : index
    %3 = vector.load %arg4[%c3, %c0_3] : memref<8x128xf32, #tpu.memory_space<vmem>>, vector<1x128xf32>
    %c4 = arith.constant 4 : index
    %c0_4 = arith.constant 0 : index
    %4 = vector.load %arg4[%c4, %c0_4] : memref<8x128xf32, #tpu.memory_space<vmem>>, vector<1x128xf32>
    %c5 = arith.constant 5 : index
    %c0_5 = arith.constant 0 : index
    %5 = vector.load %arg4[%c5, %c0_5] : memref<8x128xf32, #tpu.memory_space<vmem>>, vector<1x128xf32>
    %c6 = arith.constant 6 : index
    %c0_6 = arith.constant 0 : index
    %6 = vector.load %arg4[%c6, %c0_6] : memref<8x128xf32, #tpu.memory_space<vmem>>, vector<1x128xf32>
    %c7 = arith.constant 7 : index
    %c0_7 = arith.constant 0 : index
    %7 = vector.load %arg4[%c7, %c0_7] : memref<8x128xf32, #tpu.memory_space<vmem>>, vector<1x128xf32>
    %c0_8 = arith.constant 0 : index
    %c0_9 = arith.constant 0 : index
    %8 = vector.load %arg1[%c0_8, %c0_9] : memref<8x128xf32, #tpu.memory_space<vmem>>, vector<8x128xf32>
    %c0_10 = arith.constant 0 : index
    %c0_11 = arith.constant 0 : index
    %9 = vector.load %arg2[%c0_10, %c0_11] : memref<8x128xf32, #tpu.memory_space<vmem>>, vector<8x128xf32>
    %c0_12 = arith.constant 0 : index
    %c0_13 = arith.constant 0 : index
    %10 = vector.load %arg3[%c0_12, %c0_13] : memref<8x128xf32, #tpu.memory_space<vmem>>, vector<8x128xf32>
    %c0_14 = arith.constant 0 : index
    %c0_15 = arith.constant 0 : index
    %11 = memref.load %arg6[%c0_14, %c0_15] : memref<8x3xf32, #tpu.memory_space<smem>>
    %c0_16 = arith.constant 0 : index
    %c1_17 = arith.constant 1 : index
    %12 = memref.load %arg6[%c0_16, %c1_17] : memref<8x3xf32, #tpu.memory_space<smem>>
    %c0_18 = arith.constant 0 : index
    %c2_19 = arith.constant 2 : index
    %13 = memref.load %arg6[%c0_18, %c2_19] : memref<8x3xf32, #tpu.memory_space<smem>>
    %c0_20 = arith.constant 0 : index
    %14 = memref.load %arg7[%c0_20] : memref<8xf32, #tpu.memory_space<smem>>
    %15 = vector.broadcast %11 : f32 to vector<8x128xf32>
    %16 = arith.mulf %8, %15 : vector<8x128xf32>
    %17 = vector.broadcast %12 : f32 to vector<8x128xf32>
    %18 = arith.mulf %9, %17 : vector<8x128xf32>
    %19 = arith.addf %16, %18 : vector<8x128xf32>
    %20 = vector.broadcast %13 : f32 to vector<8x128xf32>
    %21 = arith.mulf %10, %20 : vector<8x128xf32>
    %22 = arith.addf %19, %21 : vector<8x128xf32>
    %23 = vector.broadcast %14 : f32 to vector<8x128xf32>
    %24 = arith.addf %22, %23 : vector<8x128xf32>
    %cst = arith.constant 0.000000e+00 : f32
    %25 = vector.broadcast %cst : f32 to vector<8x128xf32>
    %26 = arith.maximumf %24, %25 : vector<8x128xf32>
    %27 = vector.broadcast %0 : vector<1x128xf32> to vector<8x128xf32>
    %28 = arith.mulf %26, %27 : vector<8x128xf32>
    %c1_21 = arith.constant 1 : index
    %c0_22 = arith.constant 0 : index
    %29 = memref.load %arg6[%c1_21, %c0_22] : memref<8x3xf32, #tpu.memory_space<smem>>
    %c1_23 = arith.constant 1 : index
    %c1_24 = arith.constant 1 : index
    %30 = memref.load %arg6[%c1_23, %c1_24] : memref<8x3xf32, #tpu.memory_space<smem>>
    %c1_25 = arith.constant 1 : index
    %c2_26 = arith.constant 2 : index
    %31 = memref.load %arg6[%c1_25, %c2_26] : memref<8x3xf32, #tpu.memory_space<smem>>
    %c1_27 = arith.constant 1 : index
    %32 = memref.load %arg7[%c1_27] : memref<8xf32, #tpu.memory_space<smem>>
    %33 = vector.broadcast %29 : f32 to vector<8x128xf32>
    %34 = arith.mulf %8, %33 : vector<8x128xf32>
    %35 = vector.broadcast %30 : f32 to vector<8x128xf32>
    %36 = arith.mulf %9, %35 : vector<8x128xf32>
    %37 = arith.addf %34, %36 : vector<8x128xf32>
    %38 = vector.broadcast %31 : f32 to vector<8x128xf32>
    %39 = arith.mulf %10, %38 : vector<8x128xf32>
    %40 = arith.addf %37, %39 : vector<8x128xf32>
    %41 = vector.broadcast %32 : f32 to vector<8x128xf32>
    %42 = arith.addf %40, %41 : vector<8x128xf32>
    %cst_28 = arith.constant 0.000000e+00 : f32
    %43 = vector.broadcast %cst_28 : f32 to vector<8x128xf32>
    %44 = arith.maximumf %42, %43 : vector<8x128xf32>
    %45 = vector.broadcast %1 : vector<1x128xf32> to vector<8x128xf32>
    %46 = arith.mulf %44, %45 : vector<8x128xf32>
    %47 = arith.addf %28, %46 : vector<8x128xf32>
    %c2_29 = arith.constant 2 : index
    %c0_30 = arith.constant 0 : index
    %48 = memref.load %arg6[%c2_29, %c0_30] : memref<8x3xf32, #tpu.memory_space<smem>>
    %c2_31 = arith.constant 2 : index
    %c1_32 = arith.constant 1 : index
    %49 = memref.load %arg6[%c2_31, %c1_32] : memref<8x3xf32, #tpu.memory_space<smem>>
    %c2_33 = arith.constant 2 : index
    %c2_34 = arith.constant 2 : index
    %50 = memref.load %arg6[%c2_33, %c2_34] : memref<8x3xf32, #tpu.memory_space<smem>>
    %c2_35 = arith.constant 2 : index
    %51 = memref.load %arg7[%c2_35] : memref<8xf32, #tpu.memory_space<smem>>
    %52 = vector.broadcast %48 : f32 to vector<8x128xf32>
    %53 = arith.mulf %8, %52 : vector<8x128xf32>
    %54 = vector.broadcast %49 : f32 to vector<8x128xf32>
    %55 = arith.mulf %9, %54 : vector<8x128xf32>
    %56 = arith.addf %53, %55 : vector<8x128xf32>
    %57 = vector.broadcast %50 : f32 to vector<8x128xf32>
    %58 = arith.mulf %10, %57 : vector<8x128xf32>
    %59 = arith.addf %56, %58 : vector<8x128xf32>
    %60 = vector.broadcast %51 : f32 to vector<8x128xf32>
    %61 = arith.addf %59, %60 : vector<8x128xf32>
    %cst_36 = arith.constant 0.000000e+00 : f32
    %62 = vector.broadcast %cst_36 : f32 to vector<8x128xf32>
    %63 = arith.maximumf %61, %62 : vector<8x128xf32>
    %64 = vector.broadcast %2 : vector<1x128xf32> to vector<8x128xf32>
    %65 = arith.mulf %63, %64 : vector<8x128xf32>
    %66 = arith.addf %47, %65 : vector<8x128xf32>
    %c3_37 = arith.constant 3 : index
    %c0_38 = arith.constant 0 : index
    %67 = memref.load %arg6[%c3_37, %c0_38] : memref<8x3xf32, #tpu.memory_space<smem>>
    %c3_39 = arith.constant 3 : index
    %c1_40 = arith.constant 1 : index
    %68 = memref.load %arg6[%c3_39, %c1_40] : memref<8x3xf32, #tpu.memory_space<smem>>
    %c3_41 = arith.constant 3 : index
    %c2_42 = arith.constant 2 : index
    %69 = memref.load %arg6[%c3_41, %c2_42] : memref<8x3xf32, #tpu.memory_space<smem>>
    %c3_43 = arith.constant 3 : index
    %70 = memref.load %arg7[%c3_43] : memref<8xf32, #tpu.memory_space<smem>>
    %71 = vector.broadcast %67 : f32 to vector<8x128xf32>
    %72 = arith.mulf %8, %71 : vector<8x128xf32>
    %73 = vector.broadcast %68 : f32 to vector<8x128xf32>
    %74 = arith.mulf %9, %73 : vector<8x128xf32>
    %75 = arith.addf %72, %74 : vector<8x128xf32>
    %76 = vector.broadcast %69 : f32 to vector<8x128xf32>
    %77 = arith.mulf %10, %76 : vector<8x128xf32>
    %78 = arith.addf %75, %77 : vector<8x128xf32>
    %79 = vector.broadcast %70 : f32 to vector<8x128xf32>
    %80 = arith.addf %78, %79 : vector<8x128xf32>
    %cst_44 = arith.constant 0.000000e+00 : f32
    %81 = vector.broadcast %cst_44 : f32 to vector<8x128xf32>
    %82 = arith.maximumf %80, %81 : vector<8x128xf32>
    %83 = vector.broadcast %3 : vector<1x128xf32> to vector<8x128xf32>
    %84 = arith.mulf %82, %83 : vector<8x128xf32>
    %85 = arith.addf %66, %84 : vector<8x128xf32>
    %c4_45 = arith.constant 4 : index
    %c0_46 = arith.constant 0 : index
    %86 = memref.load %arg6[%c4_45, %c0_46] : memref<8x3xf32, #tpu.memory_space<smem>>
    %c4_47 = arith.constant 4 : index
    %c1_48 = arith.constant 1 : index
    %87 = memref.load %arg6[%c4_47, %c1_48] : memref<8x3xf32, #tpu.memory_space<smem>>
    %c4_49 = arith.constant 4 : index
    %c2_50 = arith.constant 2 : index
    %88 = memref.load %arg6[%c4_49, %c2_50] : memref<8x3xf32, #tpu.memory_space<smem>>
    %c4_51 = arith.constant 4 : index
    %89 = memref.load %arg7[%c4_51] : memref<8xf32, #tpu.memory_space<smem>>
    %90 = vector.broadcast %86 : f32 to vector<8x128xf32>
    %91 = arith.mulf %8, %90 : vector<8x128xf32>
    %92 = vector.broadcast %87 : f32 to vector<8x128xf32>
    %93 = arith.mulf %9, %92 : vector<8x128xf32>
    %94 = arith.addf %91, %93 : vector<8x128xf32>
    %95 = vector.broadcast %88 : f32 to vector<8x128xf32>
    %96 = arith.mulf %10, %95 : vector<8x128xf32>
    %97 = arith.addf %94, %96 : vector<8x128xf32>
    %98 = vector.broadcast %89 : f32 to vector<8x128xf32>
    %99 = arith.addf %97, %98 : vector<8x128xf32>
    %cst_52 = arith.constant 0.000000e+00 : f32
    %100 = vector.broadcast %cst_52 : f32 to vector<8x128xf32>
    %101 = arith.maximumf %99, %100 : vector<8x128xf32>
    %102 = vector.broadcast %4 : vector<1x128xf32> to vector<8x128xf32>
    %103 = arith.mulf %101, %102 : vector<8x128xf32>
    %104 = arith.addf %85, %103 : vector<8x128xf32>
    %c5_53 = arith.constant 5 : index
    %c0_54 = arith.constant 0 : index
    %105 = memref.load %arg6[%c5_53, %c0_54] : memref<8x3xf32, #tpu.memory_space<smem>>
    %c5_55 = arith.constant 5 : index
    %c1_56 = arith.constant 1 : index
    %106 = memref.load %arg6[%c5_55, %c1_56] : memref<8x3xf32, #tpu.memory_space<smem>>
    %c5_57 = arith.constant 5 : index
    %c2_58 = arith.constant 2 : index
    %107 = memref.load %arg6[%c5_57, %c2_58] : memref<8x3xf32, #tpu.memory_space<smem>>
    %c5_59 = arith.constant 5 : index
    %108 = memref.load %arg7[%c5_59] : memref<8xf32, #tpu.memory_space<smem>>
    %109 = vector.broadcast %105 : f32 to vector<8x128xf32>
    %110 = arith.mulf %8, %109 : vector<8x128xf32>
    %111 = vector.broadcast %106 : f32 to vector<8x128xf32>
    %112 = arith.mulf %9, %111 : vector<8x128xf32>
    %113 = arith.addf %110, %112 : vector<8x128xf32>
    %114 = vector.broadcast %107 : f32 to vector<8x128xf32>
    %115 = arith.mulf %10, %114 : vector<8x128xf32>
    %116 = arith.addf %113, %115 : vector<8x128xf32>
    %117 = vector.broadcast %108 : f32 to vector<8x128xf32>
    %118 = arith.addf %116, %117 : vector<8x128xf32>
    %cst_60 = arith.constant 0.000000e+00 : f32
    %119 = vector.broadcast %cst_60 : f32 to vector<8x128xf32>
    %120 = arith.maximumf %118, %119 : vector<8x128xf32>
    %121 = vector.broadcast %5 : vector<1x128xf32> to vector<8x128xf32>
    %122 = arith.mulf %120, %121 : vector<8x128xf32>
    %123 = arith.addf %104, %122 : vector<8x128xf32>
    %c6_61 = arith.constant 6 : index
    %c0_62 = arith.constant 0 : index
    %124 = memref.load %arg6[%c6_61, %c0_62] : memref<8x3xf32, #tpu.memory_space<smem>>
    %c6_63 = arith.constant 6 : index
    %c1_64 = arith.constant 1 : index
    %125 = memref.load %arg6[%c6_63, %c1_64] : memref<8x3xf32, #tpu.memory_space<smem>>
    %c6_65 = arith.constant 6 : index
    %c2_66 = arith.constant 2 : index
    %126 = memref.load %arg6[%c6_65, %c2_66] : memref<8x3xf32, #tpu.memory_space<smem>>
    %c6_67 = arith.constant 6 : index
    %127 = memref.load %arg7[%c6_67] : memref<8xf32, #tpu.memory_space<smem>>
    %128 = vector.broadcast %124 : f32 to vector<8x128xf32>
    %129 = arith.mulf %8, %128 : vector<8x128xf32>
    %130 = vector.broadcast %125 : f32 to vector<8x128xf32>
    %131 = arith.mulf %9, %130 : vector<8x128xf32>
    %132 = arith.addf %129, %131 : vector<8x128xf32>
    %133 = vector.broadcast %126 : f32 to vector<8x128xf32>
    %134 = arith.mulf %10, %133 : vector<8x128xf32>
    %135 = arith.addf %132, %134 : vector<8x128xf32>
    %136 = vector.broadcast %127 : f32 to vector<8x128xf32>
    %137 = arith.addf %135, %136 : vector<8x128xf32>
    %cst_68 = arith.constant 0.000000e+00 : f32
    %138 = vector.broadcast %cst_68 : f32 to vector<8x128xf32>
    %139 = arith.maximumf %137, %138 : vector<8x128xf32>
    %140 = vector.broadcast %6 : vector<1x128xf32> to vector<8x128xf32>
    %141 = arith.mulf %139, %140 : vector<8x128xf32>
    %142 = arith.addf %123, %141 : vector<8x128xf32>
    %c7_69 = arith.constant 7 : index
    %c0_70 = arith.constant 0 : index
    %143 = memref.load %arg6[%c7_69, %c0_70] : memref<8x3xf32, #tpu.memory_space<smem>>
    %c7_71 = arith.constant 7 : index
    %c1_72 = arith.constant 1 : index
    %144 = memref.load %arg6[%c7_71, %c1_72] : memref<8x3xf32, #tpu.memory_space<smem>>
    %c7_73 = arith.constant 7 : index
    %c2_74 = arith.constant 2 : index
    %145 = memref.load %arg6[%c7_73, %c2_74] : memref<8x3xf32, #tpu.memory_space<smem>>
    %c7_75 = arith.constant 7 : index
    %146 = memref.load %arg7[%c7_75] : memref<8xf32, #tpu.memory_space<smem>>
    %147 = vector.broadcast %143 : f32 to vector<8x128xf32>
    %148 = arith.mulf %8, %147 : vector<8x128xf32>
    %149 = vector.broadcast %144 : f32 to vector<8x128xf32>
    %150 = arith.mulf %9, %149 : vector<8x128xf32>
    %151 = arith.addf %148, %150 : vector<8x128xf32>
    %152 = vector.broadcast %145 : f32 to vector<8x128xf32>
    %153 = arith.mulf %10, %152 : vector<8x128xf32>
    %154 = arith.addf %151, %153 : vector<8x128xf32>
    %155 = vector.broadcast %146 : f32 to vector<8x128xf32>
    %156 = arith.addf %154, %155 : vector<8x128xf32>
    %cst_76 = arith.constant 0.000000e+00 : f32
    %157 = vector.broadcast %cst_76 : f32 to vector<8x128xf32>
    %158 = arith.maximumf %156, %157 : vector<8x128xf32>
    %159 = vector.broadcast %7 : vector<1x128xf32> to vector<8x128xf32>
    %160 = arith.mulf %158, %159 : vector<8x128xf32>
    %161 = arith.addf %142, %160 : vector<8x128xf32>
    %c0_77 = arith.constant 0 : index
    %c0_78 = arith.constant 0 : index
    %162 = vector.load %arg5[%c0_77, %c0_78] : memref<128x4xf32, #tpu.memory_space<vmem>>, vector<128x4xf32>
    %cst_79 = arith.constant dense<0.000000e+00> : vector<8x4xf32>
    %163 = tpu.matmul %161, %162, %cst_79 {dimension_numbers = #tpu.dot_dimension_numbers<[1], [0], [0], [1], [0, 0, 1, 1], [], []>} : vector<8x128xf32>, vector<128x4xf32>, vector<8x4xf32> -> vector<8x4xf32>
    %c0_80 = arith.constant 0 : index
    %c0_81 = arith.constant 0 : index
    %164 = vector.load %arg8[%c0_80, %c0_81] : memref<8x4xf32, #tpu.memory_space<vmem>>, vector<8x4xf32>
    tpu.vector_store %arg8[%c0_80, %c0_81], %163 {strides = array<i32>} : memref<8x4xf32, #tpu.memory_space<vmem>>, vector<8x4xf32>,
    return
  }
  func.func @transform_0(%arg0: i32) -> (i32, i32) {
    %c0_i32 = arith.constant 0 : i32
    %c0_i32_0 = arith.constant 0 : i32
    return %arg0, %c0_i32 : i32, i32
  }
  func.func @transform_1(%arg0: i32) -> (i32, i32) {
    %c0_i32 = arith.constant 0 : i32
    %c0_i32_0 = arith.constant 0 : i32
    return %arg0, %c0_i32 : i32, i32
  }
  func.func @transform_2(%arg0: i32) -> (i32, i32) {
    %c0_i32 = arith.constant 0 : i32
    %c0_i32_0 = arith.constant 0 : i32
    return %arg0, %c0_i32 : i32, i32
  }
  func.func @transform_3(%arg0: i32) -> (i32, i32) {
    %c0_i32 = arith.constant 0 : i32
    %c0_i32_0 = arith.constant 0 : i32
    %c0_i32_1 = arith.constant 0 : i32
    return %c0_i32, %c0_i32_0 : i32, i32
  }
  func.func @transform_4(%arg0: i32) -> (i32, i32) {
    %c0_i32 = arith.constant 0 : i32
    %c0_i32_0 = arith.constant 0 : i32
    %c0_i32_1 = arith.constant 0 : i32
    return %c0_i32, %c0_i32_0 : i32, i32
  }
  func.func @transform_5(%arg0: i32) -> (i32, i32) {
    %c0_i32 = arith.constant 0 : i32
    %c0_i32_0 = arith.constant 0 : i32
    %c0_i32_1 = arith.constant 0 : i32
    return %c0_i32, %c0_i32_0 : i32, i32
  }
  func.func @transform_6(%arg0: i32) -> i32 {
    %c0_i32 = arith.constant 0 : i32
    %c0_i32_0 = arith.constant 0 : i32
    return %c0_i32 : i32
  }
  func.func @transform_7(%arg0: i32) -> (i32, i32) {
    %c0_i32 = arith.constant 0 : i32
    %c0_i32_0 = arith.constant 0 : i32
    return %arg0, %c0_i32 : i32, i32
  }
}

</mosaic_0001>

<bundles_post_ra>
// kernel: tpu_custom_call.1
= control target key start
LH: loop header
LB: loop body
LE: loop exit
PB: predicated region body
PF: predicated region fallthrough
CT: control target
= control target key end

     0   :  { %12 = vsyncpa [#allocation3], 0  ;;  %s760_s0 = inlined_call_operand.vmem [shape: f32[8,128], index: 0, kind: input, shape index: {}]   ;;  %s761_s1 = inlined_call_operand.vmem [shape: f32[8,128], index: 1, kind: input, shape index: {}]   ;;  %s762_s2 = inlined_call_operand.vmem [shape: f32[8,128], index: 2, kind: input, shape index: {}]   ;;  %s763_s3 = inlined_call_operand.vmem [shape: f32[8,128], index: 3, kind: input, shape index: {}]   ;;  %s764_s4 = inlined_call_operand.vmem [shape: f32[128,4], index: 4, kind: input, shape index: {}]   ;;  %s765_s5 = inlined_call_operand.vmem [shape: f32[8,3], index: 5, kind: input, shape index: {}]   ;;  %s766_s6 = inlined_call_operand.vmem [shape: f32[8], index: 6, kind: input, shape index: {}]   ;;  %s767_s7 = inlined_call_operand.vmem [shape: f32[8,4], index: 7, kind: output, shape index: {}]  }
   0x1   :  { %s30_s26 = sshll.u32 %s765_s5, 4  ;;  %s31_s26 = int_to_ptr.vmem [resolvable:$true] %s30_s26 }
   0x2   :  { %13 = vsyncpa [#allocation5], 0  ;;  %s40_s29 = sshll.u32 %s766_s6, 4  ;;  %s442_s30 = scalar_lea.vmem %s31_s26, 128  ;;  %s41_s29 = int_to_ptr.vmem [resolvable:$true] %s40_s29 }
   0x3   :  { %p443_p0 = scmp.ne.s32.totalorder %s31_s26, %s442_s30  ;;  %p447_p1 = scmp.lt.s32.totalorder %s31_s26, %s31_s26 }
   0x4   :  { %p448_p2 = scmp.lt.s32.totalorder %s442_s30, %s442_s30 }
   0x6   :  { %p449_p3 = por %p448_p2, %p447_p1 }
   0x8   :  { %p450_p4 = pnand %p449_p3, %p443_p0 }
   0xa   :  { %453 = shalt.err (!%p450_p4)
}
   0xb   :  { %s470_s8 = smov [#allocation2]   ;;  %s454_s9 = scalar_lea.vmem %s41_s29, 16 }
   0xc   :  { %33 = dma.vmem_to_smem %s31_s26, 128, %s470_s8, [#allocation3]  }
   0xd   :  { %p455_p5 = scmp.ne.s32.totalorder %s41_s29, %s454_s9  ;;  %p459_p6 = scmp.lt.s32.totalorder %s41_s29, %s41_s29 }
   0xe   :  { %p460_p7 = scmp.lt.s32.totalorder %s454_s9, %s454_s9 }
  0x10   :  { %p461_p8 = por %p460_p7, %p459_p6 }
  0x12   :  { %p462_p9 = pnand %p461_p8, %p455_p5 }
  0x14   :  { %465 = shalt.err (!%p462_p9)
}
  0x15   :  { %s471_s5 = smov [#allocation4]  }
  0x16   :  { %43 = dma.vmem_to_smem %s41_s29, 16, %s471_s5, [#allocation5]  }
  0x17   :  { %466 = dma.done.wait [#allocation3], 128  }
  0x18   :  { %467 = vsyncadd [#allocation3], 4294967168 }
  0x19   :  { %468 = dma.done.wait [#allocation5], 16  }
  0x1a   :  { %469 = vsyncadd [#allocation5], 4294967280 }
  0x1b   :  { %50 = sfence }
  0x1c   :  { %v229_v0 = vld [vmem:[%s764_s4] sm:$0xff]  ;;  %v230_v1 = vld [vmem:[%s764_s4 + $0x8] sm:$0xff]  ;;  %v231_v2 = vld [vmem:[%s764_s4 + $0x10] sm:$0xff]  ;;  %v472_v3 = vmov 0.0|0.0   ;;  %vm473_vm0 = vmmov 0   ;;  %v474_v6 = vmov 0.0  }
  0x1d   :  { %413 = vmatprep.subr.bf16.mxu0 %v472_v3  ;;  %v414_v4 = vpack.c.bf16 %v230_v1, %v229_v0  ;;  %v232_v5 = vld [vmem:[%s764_s4 + $0x18] sm:$0xff]  ;;  %410 = vmatprep.mubr.msk.f32.mxu0 %vm473_vm0, %v474_v6  ;;  %s62_s17 = sld [smem:[#allocation2]]  ;;  %s323_s18 = sld [smem:[#allocation2 + $0x1]]  ;;  %v233_v8 = vld [vmem:[%s764_s4 + $0x20] sm:$0xff]  ;;  %v234_v9 = vld [vmem:[%s764_s4 + $0x28] sm:$0xff]  ;;  %vm315_vm1 = vcmask 31744  }
  0x1e   :  { %v417_v7 = vpack.c.bf16 %v232_v5, %v231_v2  ;;  %s324_s19 = sld [smem:[#allocation2 + $0x2]]  ;;  %s541_s24 = sld [smem:[#allocation4]]  ;;  %v420_v10 = vpack.c.bf16 %v234_v9, %v233_v8  ;;  %v235_v11 = vld [vmem:[%s764_s4 + $0x30] sm:$0xff]  ;;  %v236_v12 = vld [vmem:[%s764_s4 + $0x38] sm:$0xff]  ;;  %v553_v14 = vld [vmem:[%s764_s4 + $0x40] sm:$0xff] }
  0x1f   :  { %415 = vmatpush3.bf16.msra.mxu0 %v414_v4  ;;  %v558_v15 = vld [vmem:[%s764_s4 + $0x48] sm:$0xff]  ;;  %v563_v16 = vld [vmem:[%s760_s0] sm:$0xff]  ;;  %s575_s14 = sld [smem:[#allocation2 + $0x80]]  ;;  %v580_v20 = vld [vmem:[%s764_s4 + $0x50] sm:$0xff]  ;;  %s604_s23 = sld [smem:[#allocation4 + $0x1]]  ;;  %v423_v28 = vpack.c.bf16 %v236_v12, %v235_v11 }
  0x20   :  { %416 = vmatprep.subr.bf16.mxu0 %v472_v3  ;;  %v568_v17 = vld [vmem:[%s761_s1] sm:$0xff]  ;;  %v585_v21 = vld [vmem:[%s764_s4 + $0x58] sm:$0xff]  ;;  %s589_s1 = sld [smem:[#allocation2 + $0x81]]  ;;  %v601_v26 = vld [vmem:[%s764_s4 + $0x68] sm:$0xff]  ;;  %s620_s30 = sld [smem:[#allocation2 + $0x102]]  ;;  %v426_v33 = vpack.c.bf16 %v558_v15, %v553_v14 }
  0x21   :  { %v573_v18 = vld [vmem:[%s762_s2] sm:$0xff]  ;;  %s591_s2 = sld [smem:[#allocation2 + $0x82]]  ;;  %v611_v29 = vld [vmem:[%s764_s4 + $0x70] sm:$0xff]  ;;  %v616_v30 = vld [vmem:[%s764_s4 + $0x78] sm:$0xff]  ;;  %s618_s29 = sld [smem:[#allocation2 + $0x101]]  ;;  %v429_v35 = vpack.c.bf16 %v585_v21, %v580_v20 }
  0x22   :  { %v596_v25 = vld [vmem:[%s764_s4 + $0x60] sm:$0xff]  ;;  %s624_s8 = sld [smem:[#allocation4 + $0x2]]  ;;  %s626_s9 = sld [smem:[#allocation2 + $0x180]]  ;;  %v435_v37 = vpack.c.bf16 %v616_v30, %v611_v29 }
  0x23   :  { %418 = vmatpush3.bf16.msra.mxu0 %v417_v7  ;;  %v66_v13 = vstv %s62_s17  ;;  %v68_v19 = vstv %s323_s18  ;;  %s630_s4 = sld [smem:[#allocation2 + $0x181]]  ;;  %s632_s5 = sld [smem:[#allocation2 + $0x182]]  ;;  %v432_v36 = vpack.c.bf16 %v601_v26, %v596_v25  ;;  %v325_v43 = vld [vmem:[%s763_s3] ss:$0 sm:$0xff]  ;;  %v330_v9 = vld [vmem:[%s763_s3 + $0x1] ss:$0 sm:$0xff] }
  0x24   :  { %419 = vmatprep.subr.bf16.mxu0 %v472_v3  ;;  %v67_v22 = vmul.f32 %v66_v13, %v563_v16  ;;  %v69_v23 = vmul.f32 %v68_v19, %v568_v17  ;;  %v71_v24 = vstv %s324_s19  ;;  %s606_s19 = sld [smem:[#allocation2 + $0x100]]  ;;  %v74_v32 = vstv %s541_s24  ;;  %s641_s24 = sld [smem:[#allocation4 + $0x3]]  ;;  %v335_v21 = vld [vmem:[%s763_s3 + $0x2] ss:$0 sm:$0xff] }
  0x25   :  { %v72_v27 = vmul.f32 %v71_v24, %v573_v18  ;;  %v86_v38 = vstv %s575_s14  ;;  %s643_s6 = sld [smem:[#allocation2 + $0x200]]  ;;  %s648_s10 = sld [smem:[#allocation2 + $0x201]]  ;;  %v94_v46 = vstv %s604_s23 }
  0x26   :  { %v70_v31 = vadd.f32 %v69_v23, %v67_v22  ;;  %v87_v40 = vmul.f32 %v86_v38, %v563_v16  ;;  %v88_v41 = vstv %s589_s1  ;;  %s650_s11 = sld [smem:[#allocation2 + $0x202]]  ;;  %s660_s14 = sld [smem:[#allocation4 + $0x4]]  ;;  %v112_v51 = vstv %s620_s30 }
  0x27   :  { %421 = vmatpush3.bf16.msra.mxu0 %v420_v10  ;;  %v91_v42 = vstv %s591_s2  ;;  %v89_v44 = vmul.f32 %v88_v41, %v568_v17  ;;  %s662_s15 = sld [smem:[#allocation2 + $0x280]]  ;;  %v109_v50 = vstv %s618_s29  ;;  %s667_s16 = sld [smem:[#allocation2 + $0x281]]  ;;  %v113_v54 = vmul.f32 %v112_v51, %v573_v18 }
  0x28   :  { %422 = vmatprep.subr.bf16.mxu0 %v472_v3  ;;  %v73_v34 = vadd.f32 %v72_v27, %v70_v31  ;;  %v92_v45 = vmul.f32 %v91_v42, %v573_v18  ;;  %s669_s0 = sld [smem:[#allocation2 + $0x282]]  ;;  %v110_v53 = vmul.f32 %v109_v50, %v568_v17  ;;  %v115_v55 = vstv %s624_s8  ;;  %s677_s17 = sld [smem:[#allocation4 + $0x5]] }
  0x29   :  { %v90_v52 = vadd.f32 %v89_v44, %v87_v40  ;;  %v128_v57 = vstv %s626_s9  ;;  %v130_v58 = vstv %s630_s4  ;;  %v133_v59 = vstv %s632_s5  ;;  %s679_s1 = sld [smem:[#allocation2 + $0x300]]  ;;  %s688_s2 = sld [smem:[#allocation2 + $0x301]] }
  0x2a   :  { %v75_v39 = vadd.f32 %v74_v32, %v73_v34  ;;  %v107_v47 = vstv %s606_s19  ;;  %v129_v62 = vmul.f32 %v128_v57, %v563_v16  ;;  %v131_v63 = vmul.f32 %v130_v58, %v568_v17  ;;  %s690_s18 = sld [smem:[#allocation2 + $0x302]]  ;;  %s700_s22 = sld [smem:[#allocation2 + $0x380]]  ;;  %v340_v34 = vld [vmem:[%s763_s3 + $0x3] ss:$0 sm:$0xff]  ;;  %v350_v57 = vld [vmem:[%s763_s3 + $0x5] ss:$0 sm:$0xff] }
  0x2b   :  { %424 = vmatpush3.bf16.msra.mxu0 %v423_v28  ;;  %v108_v49 = vmul.f32 %v107_v47, %v563_v16  ;;  %v93_v60 = vadd.f32 %v92_v45, %v90_v52  ;;  %v134_v0 = vmul.f32 %v133_v59, %v573_v18  ;;  %v136_v1 = vstv %s641_s24  ;;  %s704_s23 = sld [smem:[#allocation4 + $0x6]]  ;;  %s712_s26 = sld [smem:[#allocation2 + $0x381]] }
  0x2c   :  { %425 = vmatprep.subr.bf16.mxu0 %v472_v3  ;;  %v76_v48 = vmax.f32 %v75_v39, 0.0  ;;  %v149_v2 = vstv %s643_s6  ;;  %v151_v4 = vstv %s648_s10  ;;  %v132_v7 = vadd.f32 %v131_v63, %v129_v62  ;;  %s714_s27 = sld [smem:[#allocation2 + $0x382]]  ;;  %s730_s30 = sld [smem:[#allocation4 + $0x7]] }
  0x2d   :  { %v111_v61 = vadd.f32 %v110_v53, %v108_v49  ;;  %v95_v5 = vadd.f32 %v94_v46, %v93_v60  ;;  %v150_v8 = vmul.f32 %v149_v2, %v563_v16  ;;  %v152_v10 = vmul.f32 %v151_v4, %v568_v17  ;;  %v345_v46 = vld [vmem:[%s763_s3 + $0x4] ss:$0 sm:$0xff] }
  0x2e   :  { %v81_v56 = vmul.f32 %v325_v43, %v76_v48  ;;  %v154_v11 = vstv %s650_s11  ;;  %v157_v12 = vstv %s660_s14  ;;  %v170_v13 = vstv %s662_s15 }
  0x2f   :  { %427 = vmatpush3.bf16.msra.mxu0 %v426_v33  ;;  %v114_v6 = vadd.f32 %v113_v54, %v111_v61  ;;  %v96_v14 = vmax.f32 %v95_v5, 0.0  ;;  %v135_v19 = vadd.f32 %v134_v0, %v132_v7  ;;  %v155_v20 = vmul.f32 %v154_v11, %v573_v18 }
  0x30   :  { %428 = vmatprep.subr.bf16.mxu0 %v472_v3  ;;  %v153_v22 = vadd.f32 %v152_v10, %v150_v8  ;;  %v171_v23 = vmul.f32 %v170_v13, %v563_v16  ;;  %v172_v24 = vstv %s667_s16  ;;  %v175_v27 = vstv %s669_s0 }
  0x31   :  { %v116_v15 = vadd.f32 %v115_v55, %v114_v6  ;;  %v101_v28 = vmul.f32 %v330_v9, %v96_v14  ;;  %v137_v32 = vadd.f32 %v136_v1, %v135_v19  ;;  %v173_v33 = vmul.f32 %v172_v24, %v568_v17 }
  0x32   :  { %v176_v38 = vmul.f32 %v175_v27, %v573_v18  ;;  %v178_v39 = vstv %s677_s17  ;;  %v191_v40 = vstv %s679_s1  ;;  %v193_v26 = vstv %s688_s2 }
  0x33   :  { %430 = vmatpush3.bf16.msra.mxu0 %v429_v35  ;;  %v117_v31 = vmax.f32 %v116_v15, 0.0  ;;  %v156_v35 = vadd.f32 %v155_v20, %v153_v22  ;;  %v102_v41 = vadd.f32 %v101_v28, %v81_v56  ;;  %v138_v43 = vmax.f32 %v137_v32, 0.0 }
  0x34   :  { %431 = vmatprep.subr.bf16.mxu0 %v472_v3  ;;  %v174_v44 = vadd.f32 %v173_v33, %v171_v23  ;;  %v192_v25 = vmul.f32 %v191_v40, %v563_v16  ;;  %v194_v49 = vmul.f32 %v193_v26, %v568_v17  ;;  %v212_v52 = vstv %s700_s22 }
  0x35   :  { %v122_v42 = vmul.f32 %v335_v21, %v117_v31  ;;  %v158_v45 = vadd.f32 %v157_v12, %v156_v35  ;;  %v213_v56 = vmul.f32 %v212_v52, %v563_v16  ;;  %v199_v59 = vstv %s704_s23  ;;  %v355_v16 = vld [vmem:[%s763_s3 + $0x6] ss:$0 sm:$0xff] }
  0x36   :  { %v177_v48 = vadd.f32 %v176_v38, %v174_v44  ;;  %v195_v55 = vadd.f32 %v194_v49, %v192_v25  ;;  %v214_v60 = vstv %s712_s26  ;;  %v217_v61 = vstv %s714_s27 }
  0x37   :  { %433 = vmatpush3.bf16.msra.mxu0 %v432_v36  ;;  %v196_v36 = vstv %s690_s18  ;;  %v123_v47 = vadd.f32 %v122_v42, %v102_v41  ;;  %v159_v50 = vmax.f32 %v158_v45, 0.0  ;;  %v218_v62 = vmul.f32 %v217_v61, %v573_v18 }
  0x38   :  { %434 = vmatprep.subr.bf16.mxu0 %v472_v3  ;;  %v143_v3 = vmul.f32 %v340_v34, %v138_v43  ;;  %v197_v51 = vmul.f32 %v196_v36, %v573_v18  ;;  %v179_v54 = vadd.f32 %v178_v39, %v177_v48  ;;  %v220_v4 = vstv %s730_s30 }
  0x39   :  { %v164_v58 = vmul.f32 %v345_v46, %v159_v50 }
  0x3a   :  { %v144_v53 = vadd.f32 %v143_v3, %v123_v47  ;;  %v180_v29 = vmax.f32 %v179_v54, 0.0  ;;  %v198_v30 = vadd.f32 %v197_v51, %v195_v55 }
  0x3b   :  { %436 = vmatpush3.bf16.msra.mxu0 %v435_v37  ;;  %v215_v37 = vmul.f32 %v214_v60, %v568_v17  ;;  %v360_v17 = vld [vmem:[%s763_s3 + $0x7] ss:$0 sm:$0xff] }
  0x3c   :  { %v165_v63 = vadd.f32 %v164_v58, %v144_v53  ;;  %v185_v0 = vmul.f32 %v350_v57, %v180_v29  ;;  %v200_v1 = vadd.f32 %v199_v59, %v198_v30 }
  0x3d   :  { %v216_v2 = vadd.f32 %v215_v37, %v213_v56 }
  0x3e   :  { %v186_v5 = vadd.f32 %v185_v0, %v165_v63  ;;  %v201_v6 = vmax.f32 %v200_v1, 0.0 }
  0x3f   :  { %v219_v7 = vadd.f32 %v218_v62, %v216_v2 }
  0x40   :  { %v206_v8 = vmul.f32 %v355_v16, %v201_v6 }
  0x41   :  { %v221_v9 = vadd.f32 %v220_v4, %v219_v7 }
  0x42   :  { %v207_v10 = vadd.f32 %v206_v8, %v186_v5 }
  0x43   :  { %v222_v18 = vmax.f32 %v221_v9, 0.0 }
  0x45   :  { %v227_v11 = vmul.f32 %v360_v17, %v222_v18 }
  0x47   :  { %v228_v12 = vadd.f32 %v227_v11, %v207_v10 }
  0x49   :  { %411 = vmatmul.mubr.f32.vlgmr.msra.gmra.mrb[0].mxu0 %v228_v12 }
 0x11c   :  { %v311_v13 = vpop.f32.mrb[0].mxu0 }
 0x11d   :  { %316 = vst.msk [vmem:[%s767_s7] sm:$0xff] %vm315_vm1, %v311_v13  ;;  %v412_v14 = vpop.f32.mrb[1].mxu0 }
 0x11e   :  { %321 = vsyncpa [#allocation3], 1 }
 0x11f   :  { %322 = vsyncpa [#allocation5], 1 }

</bundles_post_ra>
